<compile_context>
chip_gen: v6e
topology: v6e:2x2x1
jax: 0.10.0
libtpu: 0.0.40
codegen_flags: <defaults>
</compile_context>

<pallas_src>
import jax
import jax.numpy as jnp
from jax.experimental import pallas as pl
from jax.experimental.pallas import tpu as pltpu

_LANE = 128
_SUBLANE = 8
_VMEM_BUDGET = 48 * 1024 * 1024   # conservative: fits v7x (64 MiB physical) with headroom


def _cdiv(a: int, b: int) -> int:
    return -(-a // b)


def _round_up(n: int, m: int) -> int:
    return _cdiv(n, m) * m


def mlp_kernel(x_ref, w1_ref, b1_ref, w2_ref, b2_ref, out_ref):
    # fc1: cast the activation tile to bf16 in-kernel (no wrapper pad/cast),
    # f32 accumulation on the MXU.
    x = x_ref[...].astype(jnp.bfloat16)
    h = jnp.dot(x, w1_ref[...], preferred_element_type=jnp.float32)
    # bias + ReLU in f32 (v5e has no bf16 VPU path).
    h = jnp.maximum(h + b1_ref[...], 0.0)

    # fc2: bf16 operands, f32 accumulation.
    logits = jnp.dot(h.astype(jnp.bfloat16), w2_ref[...],
                     preferred_element_type=jnp.float32)
    # Padded class lanes carry a -1e30 bias -> exp() underflows to exactly 0.
    logits = logits + b2_ref[...]

    # Numerically-stable softmax over the (padded) class axis.
    m = jnp.max(logits, axis=-1, keepdims=True)
    e = jnp.exp(logits - m)
    denom = jnp.sum(e, axis=-1, keepdims=True)
    out_ref[...] = (e * pl.reciprocal(denom, approx=True)).astype(out_ref.dtype)


def prepare_mlp_params(w1, b1, w2, b2):
    """Pad + cast the static weights ONCE at model init (hoisted out of forward).

    w1: (input_size, hidden), w2: (hidden, n_classes) -- transposed vs. PyTorch.
    Padded hidden lanes are exact zeros (ReLU(0)=0, zero w2 rows); padded class
    lanes get a -1e30 bias so they vanish under softmax.
    """
    D, H = w1.shape
    H2, C = w2.shape
    assert H2 == H and b1.shape == (H,) and b2.shape == (C,)
    H_pad = _round_up(H, _LANE)
    C_pad = _round_up(C, _LANE)
    w1p = jnp.zeros((D, H_pad), jnp.bfloat16).at[:, :H].set(w1.astype(jnp.bfloat16))
    b1p = jnp.zeros((1, H_pad), jnp.float32).at[0, :H].set(b1.astype(jnp.float32))
    w2p = jnp.zeros((H_pad, C_pad), jnp.bfloat16).at[:H, :C].set(w2.astype(jnp.bfloat16))
    b2p = jnp.full((1, C_pad), -1e30, jnp.float32).at[0, :C].set(b2.astype(jnp.float32))
    return {"w1": w1p, "b1": b1p, "w2": w2p, "b2": b2p,
            "n_classes": C, "input_size": D}


def _vmem_bytes(TB: int, D: int, H_pad: int, C_pad: int, x_itemsize: int) -> int:
    x_b = 2 * TB * D * x_itemsize                    # double-buffered x tile
    out_b = 2 * TB * C_pad * 2                       # double-buffered bf16 output tile
    # Worst case: weights double-buffered (fallback path).
    w_b = 2 * (D * H_pad * 2 + H_pad * C_pad * 2 + (H_pad + C_pad) * 4)
    tmp_b = TB * (H_pad + 2 * C_pad) * 4             # h / logits / exp intermediates (f32)
    return x_b + out_b + w_b + tmp_b


def mlp_forward(x, params, *, block_b: int = 512):
    """x: (B, ...) flattened to (B, input_size). Returns softmax probs (B, C) f32."""
    w1p, b1p, w2p, b2p = params["w1"], params["b1"], params["w2"], params["b2"]
    C = params["n_classes"]
    B = x.shape[0]
    x2d = x.reshape(B, -1)                           # x.view(x.size(0), -1): no copy
    D = x2d.shape[1]
    if w1p.shape[0] != D:
        raise ValueError(f"input_size mismatch: x gives {D}, params expect {w1p.shape[0]}")
    H_pad, C_pad = w1p.shape[1], w2p.shape[1]

    # ---- Batch tiling: balanced, 8-aligned, >=2 grid steps when possible (v7x 2 TCs).
    steps = max(1, _cdiv(B, block_b))
    if steps == 1 and B > _SUBLANE:
        steps = 2
    TB = _round_up(_cdiv(B, steps), _SUBLANE)
    if TB >= B:
        TB = B                                       # full-dim block: exempt from 8-row rule
    # ---- VMEM budget (v7x has only 64 MiB physical): shrink TB until it fits.
    while TB > _SUBLANE and _vmem_bytes(TB, D, H_pad, C_pad, x2d.dtype.itemsize) > _VMEM_BUDGET:
        TB = max(_SUBLANE, _round_up(TB // 2, _SUBLANE))
    # TODO(synk): if the bf16 weights alone exceed the VMEM budget (very large D or H),
    # add a reduction grid axis over D ("arbitrary", f32 acc scratch + pl.when init)
    # instead of shrinking TB further.
    steps = _cdiv(B, TB)

    cost = pl.CostEstimate(
        flops=2 * steps * TB * (D * H_pad + H_pad * C_pad),
        transcendentals=steps * TB * C_pad,                  # exp in softmax
        bytes_accessed=(B * D * x2d.dtype.itemsize           # x read
                        + (D * H_pad + H_pad * C_pad) * 2    # resident bf16 weights
                        + (H_pad + C_pad) * 4                # biases
                        + B * C_pad * 2),                    # bf16 output write
    )

    def run(single_buffer_weights: bool):
        def w_spec(shape):
            # Constant index_map -> block never changes; single buffer halves the
            # weight VMEM footprint (more headroom for TB, esp. on v7x).
            if single_buffer_weights:
                return pl.BlockSpec(shape, lambda i: (0,) * len(shape),
                                    pipeline_mode=pl.Buffered(1))
            return pl.BlockSpec(shape, lambda i: (0,) * len(shape))

        return pl.pallas_call(
            mlp_kernel,
            out_shape=jax.ShapeDtypeStruct((B, C_pad), jnp.bfloat16),
            grid_spec=pltpu.PrefetchScalarGridSpec(
                num_scalar_prefetch=0,
                grid=(steps,),
                in_specs=[
                    # x: batch-tiled; last dim uses the full-array-dim exemption.
                    pl.BlockSpec((TB, D), lambda i: (i, 0)),
                    # Weights / biases: VMEM-resident across all grid steps.
                    w_spec((D, H_pad)),
                    w_spec((1, H_pad)),
                    w_spec((H_pad, C_pad)),
                    w_spec((1, C_pad)),
                ],
                out_specs=pl.BlockSpec((TB, C_pad), lambda i: (i, 0)),
            ),
            compiler_params=pltpu.CompilerParams(
                dimension_semantics=("parallel",),     # shard batch steps across TCs
                vmem_limit_bytes=_VMEM_BUDGET,         # above v5e/v6e scoped defaults, < v7x phys
            ),
            cost_estimate=cost,
        )(x2d, w1p, b1p, w2p, b2p)

    try:
        out_pad = run(True)       # single-buffered resident weights
    except Exception:             # pl.Buffered(1) unsupported on this jax -> default buffering
        out_pad = run(False)

    # Strip padded class lanes; give callers f32 probabilities.
    return out_pad[:, :C].astype(jnp.float32)


if __name__ == "__main__":
    # Small shapes consistent with the module: image-like input, flattened.
    B, Cin, Hs, Ws = 8, 4, 8, 8               # input_size = 4*8*8 = 256
    input_size = Cin * Hs * Ws
    hidden_size = 32
    n_classes = 10

    key = jax.random.PRNGKey(0)
    kx, k1, k2, k3, k4 = jax.random.split(key, 5)

    x = jax.random.normal(kx, (B, Cin, Hs, Ws), dtype=jnp.float32)

    # Deterministic parameter init (uniform, like nn.Linear's default range).
    bound1 = 1.0 / (input_size ** 0.5)
    w1 = jax.random.uniform(k1, (input_size, hidden_size), jnp.float32, -bound1, bound1)
    b1 = jax.random.uniform(k2, (hidden_size,), jnp.float32, -bound1, bound1)
    bound2 = 1.0 / (hidden_size ** 0.5)
    w2 = jax.random.uniform(k3, (hidden_size, n_classes), jnp.float32, -bound2, bound2)
    b2 = jax.random.uniform(k4, (n_classes,), jnp.float32, -bound2, bound2)

    # Weight padding / bf16 cast done ONCE at model init (hoisted out of forward).
    params = prepare_mlp_params(w1, b1, w2, b2)

    out = mlp_forward(x, params)
    out = jax.block_until_ready(out)
    assert out.shape == (B, n_classes)

    # Reference mirroring the kernel's bf16-operand / f32-accumulate matmuls.
    x2d = x.reshape(B, -1)
    h_ref = jnp.maximum(
        jnp.dot(x2d.astype(jnp.bfloat16), w1.astype(jnp.bfloat16),
                preferred_element_type=jnp.float32) + b1, 0.0)
    logits_ref = jnp.dot(h_ref.astype(jnp.bfloat16), w2.astype(jnp.bfloat16),
                         preferred_element_type=jnp.float32) + b2
    ref_bf16 = jax.nn.softmax(logits_ref, axis=1)
    # Kernel output is bf16-quantized -> allow ~half-ulp-of-bf16 slack.
    assert jnp.allclose(out, ref_bf16, atol=1e-2), "mismatch vs bf16 reference"

    # Loose check against the pure-f32 reference (bf16 matmul error budget).
    ref_f32 = jax.nn.softmax(jnp.maximum(x2d @ w1 + b1, 0.0) @ w2 + b2, axis=1)
    assert jnp.allclose(out, ref_f32, atol=3e-2), "mismatch vs f32 reference"

    # Rows sum to ~1 (bf16 output quantization + approx reciprocal).
    assert jnp.allclose(jnp.sum(out, axis=1), 1.0, atol=2e-2)

    print("KERNEL_OK")
</pallas_src>

<mosaic_0001>
module attributes {stable_mosaic.version = 11 : i64} {
  func.func @mlp_kernel(%arg0: i32, %arg1: memref<8x256xf32, #tpu.memory_space<vmem>>, %arg2: memref<256x128xbf16, #tpu.memory_space<vmem>>, %arg3: memref<1x128xf32, #tpu.memory_space<vmem>>, %arg4: memref<128x128xbf16, #tpu.memory_space<vmem>>, %arg5: memref<1x128xf32, #tpu.memory_space<vmem>>, %arg6: memref<8x128xbf16, #tpu.memory_space<vmem>>) attributes {dimension_semantics = [#tpu.dimension_semantics<parallel>], iteration_bounds = array<i64: 1>, scalar_prefetch = 0 : i64, scratch_operands = 0 : i64, tpu.core_type = #tpu.core_type<tc>, window_params = [{transform_indices = @transform_0, window_bounds = array<i64: 8, 256>}, {pipeline_mode = #tpu.pipeline_mode<synchronous>, transform_indices = @transform_1, window_bounds = array<i64: 256, 128>}, {pipeline_mode = #tpu.pipeline_mode<synchronous>, transform_indices = @transform_2, window_bounds = array<i64: 1, 128>}, {pipeline_mode = #tpu.pipeline_mode<synchronous>, transform_indices = @transform_3, window_bounds = array<i64: 128, 128>}, {pipeline_mode = #tpu.pipeline_mode<synchronous>, transform_indices = @transform_4, window_bounds = array<i64: 1, 128>}, {transform_indices = @transform_5, window_bounds = array<i64: 8, 128>}]} {
    %c0 = arith.constant 0 : index
    %c0_0 = arith.constant 0 : index
    %0 = vector.load %arg1[%c0, %c0_0] : memref<8x256xf32, #tpu.memory_space<vmem>>, vector<8x256xf32>
    %1 = arith.truncf %0 : vector<8x256xf32> to vector<8x256xbf16>
    %c0_1 = arith.constant 0 : index
    %c0_2 = arith.constant 0 : index
    %2 = vector.load %arg2[%c0_1, %c0_2] : memref<256x128xbf16, #tpu.memory_space<vmem>>, vector<256x128xbf16>
    %cst = arith.constant dense<0.000000e+00> : vector<8x128xf32>
    %3 = tpu.matmul %1, %2, %cst {dimension_numbers = #tpu.dot_dimension_numbers<[1], [0], [0], [1], [0, 0, 1, 1], [], []>} : vector<8x256xbf16>, vector<256x128xbf16>, vector<8x128xf32> -> vector<8x128xf32>
    %c0_3 = arith.constant 0 : index
    %c0_4 = arith.constant 0 : index
    %4 = vector.load %arg3[%c0_3, %c0_4] : memref<1x128xf32, #tpu.memory_space<vmem>>, vector<1x128xf32>
    %5 = vector.broadcast %4 : vector<1x128xf32> to vector<8x128xf32>
    %6 = arith.addf %3, %5 : vector<8x128xf32>
    %cst_5 = arith.constant 0.000000e+00 : f32
    %7 = vector.broadcast %cst_5 : f32 to vector<8x128xf32>
    %8 = arith.maximumf %6, %7 : vector<8x128xf32>
    %9 = arith.truncf %8 : vector<8x128xf32> to vector<8x128xbf16>
    %c0_6 = arith.constant 0 : index
    %c0_7 = arith.constant 0 : index
    %10 = vector.load %arg4[%c0_6, %c0_7] : memref<128x128xbf16, #tpu.memory_space<vmem>>, vector<128x128xbf16>
    %cst_8 = arith.constant dense<0.000000e+00> : vector<8x128xf32>
    %11 = tpu.matmul %9, %10, %cst_8 {dimension_numbers = #tpu.dot_dimension_numbers<[1], [0], [0], [1], [0, 0, 1, 1], [], []>} : vector<8x128xbf16>, vector<128x128xbf16>, vector<8x128xf32> -> vector<8x128xf32>
    %c0_9 = arith.constant 0 : index
    %c0_10 = arith.constant 0 : index
    %12 = vector.load %arg5[%c0_9, %c0_10] : memref<1x128xf32, #tpu.memory_space<vmem>>, vector<1x128xf32>
    %13 = vector.broadcast %12 : vector<1x128xf32> to vector<8x128xf32>
    %14 = arith.addf %11, %13 : vector<8x128xf32>
    %cst_11 = arith.constant dense<0xFF800000> : vector<8xf32>
    %15 = vector.multi_reduction <maximumf>, %14, %cst_11 [1] : vector<8x128xf32> to vector<8xf32>
    %16 = vector.shape_cast %15 : vector<8xf32> to vector<8x1xf32>
    %17 = vector.broadcast %16 : vector<8x1xf32> to vector<8x128xf32>
    %18 = arith.subf %14, %17 : vector<8x128xf32>
    %19 = math.exp %18 : vector<8x128xf32>
    %cst_12 = arith.constant dense<0.000000e+00> : vector<8xf32>
    %20 = vector.multi_reduction <add>, %19, %cst_12 [1] : vector<8x128xf32> to vector<8xf32>
    %21 = vector.shape_cast %20 : vector<8xf32> to vector<8x1xf32>
    %22 = tpu.reciprocal %21 {approx = true} : vector<8x1xf32> -> vector<8x1xf32>
    %23 = vector.broadcast %22 : vector<8x1xf32> to vector<8x128xf32>
    %24 = arith.mulf %19, %23 : vector<8x128xf32>
    %25 = arith.truncf %24 : vector<8x128xf32> to vector<8x128xbf16>
    %c0_13 = arith.constant 0 : index
    %c0_14 = arith.constant 0 : index
    %26 = vector.load %arg6[%c0_13, %c0_14] : memref<8x128xbf16, #tpu.memory_space<vmem>>, vector<8x128xbf16>
    tpu.vector_store %arg6[%c0_13, %c0_14], %25 {strides = array<i32>} : memref<8x128xbf16, #tpu.memory_space<vmem>>, vector<8x128xbf16>,
    return
  }
  func.func @transform_0(%arg0: i32) -> (i32, i32) {
    %c0_i32 = arith.constant 0 : i32
    %c0_i32_0 = arith.constant 0 : i32
    return %arg0, %c0_i32 : i32, i32
  }
  func.func @transform_1(%arg0: i32) -> (i32, i32) {
    %c0_i32 = arith.constant 0 : i32
    %c0_i32_0 = arith.constant 0 : i32
    %c0_i32_1 = arith.constant 0 : i32
    return %c0_i32, %c0_i32_0 : i32, i32
  }
  func.func @transform_2(%arg0: i32) -> (i32, i32) {
    %c0_i32 = arith.constant 0 : i32
    %c0_i32_0 = arith.constant 0 : i32
    %c0_i32_1 = arith.constant 0 : i32
    return %c0_i32, %c0_i32_0 : i32, i32
  }
  func.func @transform_3(%arg0: i32) -> (i32, i32) {
    %c0_i32 = arith.constant 0 : i32
    %c0_i32_0 = arith.constant 0 : i32
    %c0_i32_1 = arith.constant 0 : i32
    return %c0_i32, %c0_i32_0 : i32, i32
  }
  func.func @transform_4(%arg0: i32) -> (i32, i32) {
    %c0_i32 = arith.constant 0 : i32
    %c0_i32_0 = arith.constant 0 : i32
    %c0_i32_1 = arith.constant 0 : i32
    return %c0_i32, %c0_i32_0 : i32, i32
  }
  func.func @transform_5(%arg0: i32) -> (i32, i32) {
    %c0_i32 = arith.constant 0 : i32
    %c0_i32_0 = arith.constant 0 : i32
    return %arg0, %c0_i32 : i32, i32
  }
}

module attributes {stable_mosaic.version = 11 : i64} {
  func.func @mlp_kernel(%arg0: i32, %arg1: memref<8x256xf32, #tpu.memory_space<vmem>>, %arg2: memref<256x128xbf16, #tpu.memory_space<vmem>>, %arg3: memref<1x128xf32, #tpu.memory_space<vmem>>, %arg4: memref<128x128xbf16, #tpu.memory_space<vmem>>, %arg5: memref<1x128xf32, #tpu.memory_space<vmem>>, %arg6: memref<8x128xbf16, #tpu.memory_space<vmem>>) attributes {dimension_semantics = [#tpu.dimension_semantics<parallel>], iteration_bounds = array<i64: 1>, scalar_prefetch = 0 : i64, scratch_operands = 0 : i64, tpu.core_type = #tpu.core_type<tc>, window_params = [{transform_indices = @transform_0, window_bounds = array<i64: 8, 256>}, {pipeline_mode = #tpu.pipeline_mode<synchronous>, transform_indices = @transform_1, window_bounds = array<i64: 256, 128>}, {pipeline_mode = #tpu.pipeline_mode<synchronous>, transform_indices = @transform_2, window_bounds = array<i64: 1, 128>}, {pipeline_mode = #tpu.pipeline_mode<synchronous>, transform_indices = @transform_3, window_bounds = array<i64: 128, 128>}, {pipeline_mode = #tpu.pipeline_mode<synchronous>, transform_indices = @transform_4, window_bounds = array<i64: 1, 128>}, {transform_indices = @transform_5, window_bounds = array<i64: 8, 128>}]} {
    %c0 = arith.constant 0 : index
    %c0_0 = arith.constant 0 : index
    %0 = vector.load %arg1[%c0, %c0_0] : memref<8x256xf32, #tpu.memory_space<vmem>>, vector<8x256xf32>
    %1 = arith.truncf %0 : vector<8x256xf32> to vector<8x256xbf16>
    %c0_1 = arith.constant 0 : index
    %c0_2 = arith.constant 0 : index
    %2 = vector.load %arg2[%c0_1, %c0_2] : memref<256x128xbf16, #tpu.memory_space<vmem>>, vector<256x128xbf16>
    %cst = arith.constant dense<0.000000e+00> : vector<8x128xf32>
    %3 = tpu.matmul %1, %2, %cst {dimension_numbers = #tpu.dot_dimension_numbers<[1], [0], [0], [1], [0, 0, 1, 1], [], []>} : vector<8x256xbf16>, vector<256x128xbf16>, vector<8x128xf32> -> vector<8x128xf32>
    %c0_3 = arith.constant 0 : index
    %c0_4 = arith.constant 0 : index
    %4 = vector.load %arg3[%c0_3, %c0_4] : memref<1x128xf32, #tpu.memory_space<vmem>>, vector<1x128xf32>
    %5 = vector.broadcast %4 : vector<1x128xf32> to vector<8x128xf32>
    %6 = arith.addf %3, %5 : vector<8x128xf32>
    %cst_5 = arith.constant 0.000000e+00 : f32
    %7 = vector.broadcast %cst_5 : f32 to vector<8x128xf32>
    %8 = arith.maximumf %6, %7 : vector<8x128xf32>
    %9 = arith.truncf %8 : vector<8x128xf32> to vector<8x128xbf16>
    %c0_6 = arith.constant 0 : index
    %c0_7 = arith.constant 0 : index
    %10 = vector.load %arg4[%c0_6, %c0_7] : memref<128x128xbf16, #tpu.memory_space<vmem>>, vector<128x128xbf16>
    %cst_8 = arith.constant dense<0.000000e+00> : vector<8x128xf32>
    %11 = tpu.matmul %9, %10, %cst_8 {dimension_numbers = #tpu.dot_dimension_numbers<[1], [0], [0], [1], [0, 0, 1, 1], [], []>} : vector<8x128xbf16>, vector<128x128xbf16>, vector<8x128xf32> -> vector<8x128xf32>
    %c0_9 = arith.constant 0 : index
    %c0_10 = arith.constant 0 : index
    %12 = vector.load %arg5[%c0_9, %c0_10] : memref<1x128xf32, #tpu.memory_space<vmem>>, vector<1x128xf32>
    %13 = vector.broadcast %12 : vector<1x128xf32> to vector<8x128xf32>
    %14 = arith.addf %11, %13 : vector<8x128xf32>
    %cst_11 = arith.constant dense<0xFF800000> : vector<8xf32>
    %15 = vector.multi_reduction <maximumf>, %14, %cst_11 [1] : vector<8x128xf32> to vector<8xf32>
    %16 = vector.shape_cast %15 : vector<8xf32> to vector<8x1xf32>
    %17 = vector.broadcast %16 : vector<8x1xf32> to vector<8x128xf32>
    %18 = arith.subf %14, %17 : vector<8x128xf32>
    %19 = math.exp %18 : vector<8x128xf32>
    %cst_12 = arith.constant dense<0.000000e+00> : vector<8xf32>
    %20 = vector.multi_reduction <add>, %19, %cst_12 [1] : vector<8x128xf32> to vector<8xf32>
    %21 = vector.shape_cast %20 : vector<8xf32> to vector<8x1xf32>
    %22 = tpu.reciprocal %21 {approx = true} : vector<8x1xf32> -> vector<8x1xf32>
    %23 = vector.broadcast %22 : vector<8x1xf32> to vector<8x128xf32>
    %24 = arith.mulf %19, %23 : vector<8x128xf32>
    %25 = arith.truncf %24 : vector<8x128xf32> to vector<8x128xbf16>
    %c0_13 = arith.constant 0 : index
    %c0_14 = arith.constant 0 : index
    %26 = vector.load %arg6[%c0_13, %c0_14] : memref<8x128xbf16, #tpu.memory_space<vmem>>, vector<8x128xbf16>
    tpu.vector_store %arg6[%c0_13, %c0_14], %25 {strides = array<i32>} : memref<8x128xbf16, #tpu.memory_space<vmem>>, vector<8x128xbf16>,
    return
  }
  func.func @transform_0(%arg0: i32) -> (i32, i32) {
    %c0_i32 = arith.constant 0 : i32
    %c0_i32_0 = arith.constant 0 : i32
    return %arg0, %c0_i32 : i32, i32
  }
  func.func @transform_1(%arg0: i32) -> (i32, i32) {
    %c0_i32 = arith.constant 0 : i32
    %c0_i32_0 = arith.constant 0 : i32
    %c0_i32_1 = arith.constant 0 : i32
    return %c0_i32, %c0_i32_0 : i32, i32
  }
  func.func @transform_2(%arg0: i32) -> (i32, i32) {
    %c0_i32 = arith.constant 0 : i32
    %c0_i32_0 = arith.constant 0 : i32
    %c0_i32_1 = arith.constant 0 : i32
    return %c0_i32, %c0_i32_0 : i32, i32
  }
  func.func @transform_3(%arg0: i32) -> (i32, i32) {
    %c0_i32 = arith.constant 0 : i32
    %c0_i32_0 = arith.constant 0 : i32
    %c0_i32_1 = arith.constant 0 : i32
    return %c0_i32, %c0_i32_0 : i32, i32
  }
  func.func @transform_4(%arg0: i32) -> (i32, i32) {
    %c0_i32 = arith.constant 0 : i32
    %c0_i32_0 = arith.constant 0 : i32
    %c0_i32_1 = arith.constant 0 : i32
    return %c0_i32, %c0_i32_0 : i32, i32
  }
  func.func @transform_5(%arg0: i32) -> (i32, i32) {
    %c0_i32 = arith.constant 0 : i32
    %c0_i32_0 = arith.constant 0 : i32
    return %arg0, %c0_i32 : i32, i32
  }
}

</mosaic_0001>

<bundles_post_ra>
// kernel: tpu_custom_call.1
= control target key start
LH: loop header
LB: loop body
LE: loop exit
PB: predicated region body
PF: predicated region fallthrough
CT: control target
= control target key end

     0   :  { %10 = vsyncpa [#allocation3], 0  ;;  %s644_s0 = inlined_call_operand.hbm [shape: f32[8,256], index: 0, kind: input, shape index: {}]   ;;  %s645_s1 = inlined_call_operand.hbm [shape: bf16[256,128], index: 1, kind: input, shape index: {}]   ;;  %s646_s2 = inlined_call_operand.vmem [shape: f32[1,128], index: 2, kind: input, shape index: {}]   ;;  %s647_s3 = inlined_call_operand.hbm [shape: bf16[128,128], index: 3, kind: input, shape index: {}]   ;;  %s648_s4 = inlined_call_operand.vmem [shape: f32[1,128], index: 4, kind: input, shape index: {}]   ;;  %s649_s5 = inlined_call_operand.hbm [shape: bf16[8,128], index: 5, kind: output, shape index: {}]  }
   0x1   :  { %11 = vsyncpa [#allocation6], 0 }
   0x2   :  { %12 = vsyncpa [#allocation4], 0  ;;  %s579_s18 = smov [#allocation5]  }
   0x3   :  { %s28_s19 = sshll.u32 %s579_s18, 4  ;;  %s29_s19 = int_to_ptr.vmem [resolvable:$true] %s28_s19 }
   0x4   :  { %s501_s20 = scalar_lea.vmem %s29_s19, 2048  ;;  %p506_p1 = scmp.lt.s32.totalorder %s29_s19, %s29_s19 }
   0x5   :  { %p502_p0 = scmp.ne.s32.totalorder %s29_s19, %s501_s20  ;;  %p507_p2 = scmp.lt.s32.totalorder %s501_s20, %s501_s20 }
   0x7   :  { %p508_p3 = por %p507_p2, %p506_p1 }
   0x9   :  { %p509_p4 = pnand %p508_p3, %p502_p0 }
   0xb   :  { %512 = shalt.err (!%p509_p4)
}
   0xc   :  { %s580_s21 = smov 64   ;;  %s581_s22 = smov 4  }
   0xd   :  { %34 = dma.hbm_to_vmem [thread:$0]  %s645_s1, 2048, %s29_s19, [#allocation6], %s580_s21, %s580_s21, %s581_s22  }
   0xe   :  { %s582_s25 = smov [#allocation2]   ;;  %s583_s27 = smov [#allocation7]  }
   0xf   :  { %s19_s26 = sshll.u32 %s582_s25, 4  ;;  %s42_s28 = sshll.u32 %s583_s27, 4  ;;  %s20_s26 = int_to_ptr.vmem [resolvable:$true] %s19_s26  ;;  %s43_s28 = int_to_ptr.vmem [resolvable:$true] %s42_s28 }
  0x10   :  { %s521_s29 = scalar_lea.vmem %s20_s26, 256  ;;  %p526_p6 = scmp.lt.s32.totalorder %s20_s26, %s20_s26 }
  0x11   :  { %p522_p5 = scmp.ne.s32.totalorder %s20_s26, %s521_s29  ;;  %p527_p7 = scmp.lt.s32.totalorder %s521_s29, %s521_s29 }
  0x13   :  { %p528_p8 = por %p527_p7, %p526_p6 }
  0x15   :  { %p529_p9 = pnand %p528_p8, %p522_p5 }
  0x17   :  { %532 = shalt.err (!%p529_p9)
}
  0x18   :  { %22 = dma.hbm_to_vmem [thread:$0]  %s644_s0, 256, %s20_s26, [#allocation3]  }
  0x19   :  { %s541_s7 = scalar_lea.vmem %s43_s28, 1024  ;;  %p546_p11 = scmp.lt.s32.totalorder %s43_s28, %s43_s28 }
  0x1a   :  { %p542_p10 = scmp.ne.s32.totalorder %s43_s28, %s541_s7  ;;  %p547_p12 = scmp.lt.s32.totalorder %s541_s7, %s541_s7 }
  0x1c   :  { %p548_p13 = por %p547_p12, %p546_p11 }
  0x1e   :  { %p549_p0 = pnand %p548_p13, %p542_p10 }
  0x20   :  { %552 = shalt.err (!%p549_p0)
}
  0x21   :  { %48 = dma.hbm_to_vmem [thread:$0]  %s647_s3, 1024, %s43_s28, [#allocation6], %s580_s21, %s580_s21, %s581_s22  }
  0x22   :  { %573 = dma.done.wait [#allocation3], 256  }
  0x23   :  { %574 = vsyncadd [#allocation3], 4294967040 }
  0x24   :  { %575 = dma.done.wait [#allocation6], 3072  }
  0x25   :  { %576 = vsyncadd [#allocation6], 4294964224  ;;  %v584_v0 = vmov 0.0   ;;  %v465_v1 = vld [vmem:[#allocation5 + $0x78] sm:$0xff]   ;;  %v467_v3 = vld [vmem:[#allocation5 + $0x70] sm:$0xff]   ;;  %vm585_vm0 = vmmov 0  }
  0x26   :  { %437 = vmatprep.subr.bf16.mxu1 %v584_v0  ;;  %v466_v2 = vld [vmem:[#allocation5 + $0x38] sm:$0xff]   ;;  %406 = vmatprep.subr.bf16.mxu0 %v465_v1  ;;  %v468_v4 = vld [vmem:[#allocation5 + $0x30] sm:$0xff]   ;;  %v469_v5 = vld [vmem:[#allocation5 + $0x68] sm:$0xff]  }
  0x27   :  { %407 = vmatpush3.bf16.msra.mxu0 %v466_v2  ;;  %v470_v6 = vld [vmem:[#allocation5 + $0x28] sm:$0xff]   ;;  %v471_v7 = vld [vmem:[#allocation5 + $0x60] sm:$0xff]   ;;  %v473_v9 = vld [vmem:[#allocation5 + $0x58] sm:$0xff]   ;;  %453 = vmatprep.mubr.msk.bf16.mxu1 %vm585_vm0, %v584_v0 }
  0x28   :  { %408 = vmatprep.subr.bf16.mxu0 %v467_v3  ;;  %v472_v8 = vld [vmem:[#allocation5 + $0x20] sm:$0xff]   ;;  %v474_v10 = vld [vmem:[#allocation5 + $0x18] sm:$0xff]   ;;  %v475_v11 = vld [vmem:[#allocation5 + $0x50] sm:$0xff]  }
  0x29   :  { %v62_v12 = vld [vmem:[#allocation2 + $0x8] sm:$0xff]  ;;  %v476_v15 = vld [vmem:[#allocation5 + $0x10] sm:$0xff]   ;;  %v477_v16 = vld [vmem:[#allocation5 + $0x48] sm:$0xff]  }
  0x2a   :  { %v64_v13 = vpack.c.bf16 %v62_v12, %v62_v12  ;;  %v481_v14 = vld [vmem:[#allocation7 + $0x38] sm:$0xff]   ;;  %v482_v17 = vld [vmem:[#allocation7 + $0x30] sm:$0xff]   ;;  %v478_v18 = vld [vmem:[#allocation5 + $0x8] sm:$0xff]  }
  0x2b   :  { %409 = vmatpush3.bf16.msra.mxu0 %v468_v4  ;;  %438 = vmatpush3.bf16.msra.mxu1 %v481_v14  ;;  %v479_v19 = vld [vmem:[#allocation5 + $0x40] sm:$0xff]   ;;  %v483_v20 = vld [vmem:[#allocation7 + $0x28] sm:$0xff]   ;;  %v61_v22 = vld [vmem:[#allocation2] sm:$0xff] }
  0x2c   :  { %410 = vmatprep.subr.bf16.mxu0 %v469_v5  ;;  %232 = vmatprep.mubr.bf16.mxu0 %v64_v13  ;;  %v480_v21 = vld [vmem:[#allocation5] sm:$0xff]   ;;  %v63_v24 = vpack.c.bf16 %v61_v22, %v61_v22  ;;  %v485_v25 = vld [vmem:[#allocation7 + $0x18] sm:$0xff]   ;;  %v486_v26 = vld [vmem:[#allocation7 + $0x10] sm:$0xff]  }
  0x2d   :  { %439 = vmatprep.subr.bf16.mxu1 %v584_v0  ;;  %v484_v23 = vld [vmem:[#allocation7 + $0x20] sm:$0xff]   ;;  %v487_v27 = vld [vmem:[#allocation7 + $0x8] sm:$0xff]   ;;  %v380_v30 = vld [vmem:[%s646_s2] ss:$0 sm:$0xff]  ;;  %s586_s2 = smov [#allocation8]  }
  0x2e   :  { %v488_v28 = vld [vmem:[#allocation7] sm:$0xff]   ;;  %v397_v38 = vld [vmem:[%s648_s4] ss:$0 sm:$0xff]  ;;  %s370_s11 = sshll.u32 %s586_s2, 4  ;;  %s371_s11 = int_to_ptr.vmem [resolvable:$true] %s370_s11 }
  0x2f   :  { %411 = vmatpush3.bf16.msra.mxu0 %v470_v6  ;;  %440 = vmatpush3.bf16.msra.mxu1 %v482_v17  ;;  %s553_s4 = scalar_lea.vmem %s371_s11, 64  ;;  %p558_p2 = scmp.lt.s32.totalorder %s371_s11, %s371_s11 }
  0x30   :  { %412 = vmatprep.subr.bf16.mxu0 %v471_v7  ;;  %441 = vmatprep.subr.bf16.mxu1 %v584_v0  ;;  %p554_p1 = scmp.ne.s32.totalorder %s371_s11, %s553_s4  ;;  %p559_p3 = scmp.lt.s32.totalorder %s553_s4, %s553_s4 }
  0x32   :  { %p560_p4 = por %p559_p3, %p558_p2 }
  0x33   :  { %413 = vmatpush3.bf16.msra.mxu0 %v472_v8  ;;  %442 = vmatpush3.bf16.msra.mxu1 %v483_v20 }
  0x34   :  { %414 = vmatprep.subr.bf16.mxu0 %v473_v9  ;;  %443 = vmatprep.subr.bf16.mxu1 %v584_v0  ;;  %p561_p5 = pnand %p560_p4, %p554_p1 }
  0x37   :  { %415 = vmatpush3.bf16.msra.mxu0 %v474_v10  ;;  %444 = vmatpush3.bf16.msra.mxu1 %v484_v23 }
  0x38   :  { %416 = vmatprep.subr.bf16.mxu0 %v475_v11  ;;  %445 = vmatprep.subr.bf16.mxu1 %v584_v0 }
  0x3b   :  { %417 = vmatpush3.bf16.msra.mxu0 %v476_v15  ;;  %446 = vmatpush3.bf16.msra.mxu1 %v485_v25 }
  0x3c   :  { %418 = vmatprep.subr.bf16.mxu0 %v477_v16  ;;  %447 = vmatprep.subr.bf16.mxu1 %v584_v0 }
  0x3f   :  { %419 = vmatpush3.bf16.msra.mxu0 %v478_v18  ;;  %448 = vmatpush3.bf16.msra.mxu1 %v486_v26 }
  0x40   :  { %420 = vmatprep.subr.bf16.mxu0 %v479_v19  ;;  %449 = vmatprep.subr.bf16.mxu1 %v584_v0 }
  0x43   :  { %421 = vmatpush3.bf16.msra.mxu0 %v480_v21  ;;  %450 = vmatpush3.bf16.msra.mxu1 %v487_v27 }
  0x44   :  { %451 = vmatprep.subr.bf16.mxu1 %v584_v0 }
  0x46   :  { %233 = vmatmul.mubr.bf16.vlgmr.msra.gmra.mxu0 %v63_v24 }
  0x47   :  { %452 = vmatpush3.bf16.msra.mxu1 %v488_v28 }
 0x106   :  { %v422_v29 = vpop.f32.mrf.mxu0 }
 0x108   :  { %v423_v31 = vpop.f32.mrf.mxu0 }
 0x109   :  { %v424_v32 = vadd.f32 %v423_v31, %v422_v29 }
 0x10a   :  { %v425_v33 = vpop.f32.mrf.mxu0 }
 0x10b   :  { %v235_v34 = vadd.f32 %v424_v32, %v380_v30 }
 0x10c   :  { %v426_v35 = vpop.f32.mrf.mxu0 }
 0x10d   :  { %v240_v36 = vmax.f32 %v235_v34, 0.0 }
 0x10f   :  { %v241_v37 = vpack.c.bf16 %v240_v36, %v240_v36 }
 0x111   :  { %454 = vmatmul.mubr.bf16.vlgmr.msra.gmra.mxu1 %v241_v37 }
 0x1d1   :  { %v347_v39 = vpop.f32.mrf.mxu1 }
 0x1d2   :  { %v348_v40 = vadd.f32 %v397_v38, %v347_v39 }
 0x1d3   :  { %v455_v41 = vpop.f32.mrf.mxu1 }
 0x1d4   :  { %353 = vmax.xlane.f32.xlu0 %v348_v40 }
 0x1d5   :  { %v350_v42 = vpop.f32.mrf.mxu1 }
 0x1d7   :  { %v456_v43 = vpop.f32.mrf.mxu1 }
 0x25d   :  { %v354_v44 = vpop.xlane.xlu0 %353 }
 0x25e   :  { %v355_v45 = vsub.f32 %v348_v40, %v354_v44 }
 0x260   :  { %v356_v46 = vmul.f32 1.442695, %v355_v45 }
 0x262   :  { %489 = vpow2.f32 %v356_v46 }
 0x26f   :  { %v490_v47 = vpop.eup %489 }
 0x270   :  { %358 = vadd.xlane.f32.xlu0 %v490_v47 }
 0x2f9   :  { %v359_v48 = vpop.xlane.xlu0 %358 }
 0x2fa   :  { %491 = vrcp.f32 %v359_v48 }
 0x307   :  { %v492_v49 = vpop.eup %491 }
 0x308   :  { %v361_v50 = vmul.f32 %v492_v49, %v490_v47 }
 0x30a   :  { %v362_v51 = vpack.c.bf16 %v361_v50, %v361_v50 }
 0x30c   :  { %363 = vst [vmem:[#allocation8] sm:$0xf] %v362_v51 }
 0x30d   :  { %564 = shalt.err (!%p561_p5)
}
 0x30e   :  { %373 = dma.vmem_to_hbm [thread:$0]  %s371_s11, 64, %s649_s5, [#allocation4]  }
 0x30f   :  { %577 = dma.done.wait [#allocation4], 64  }
 0x310   :  { %578 = vsyncadd [#allocation4], 4294967232 }
 0x311   :  { %377 = vsyncpa [#allocation3], 1 }
 0x312   :  { %378 = vsyncpa [#allocation6], 1 }
 0x313   :  { %379 = vsyncpa [#allocation4], 1 }

// kernel: tpu_custom_call.1
= control target key start
LH: loop header
LB: loop body
LE: loop exit
PB: predicated region body
PF: predicated region fallthrough
CT: control target
= control target key end

     0   :  { %10 = vsyncpa [#allocation3], 0  ;;  %s644_s0 = inlined_call_operand.hbm [shape: f32[8,256], index: 0, kind: input, shape index: {}]   ;;  %s645_s1 = inlined_call_operand.hbm [shape: bf16[256,128], index: 1, kind: input, shape index: {}]   ;;  %s646_s2 = inlined_call_operand.vmem [shape: f32[1,128], index: 2, kind: input, shape index: {}]   ;;  %s647_s3 = inlined_call_operand.hbm [shape: bf16[128,128], index: 3, kind: input, shape index: {}]   ;;  %s648_s4 = inlined_call_operand.vmem [shape: f32[1,128], index: 4, kind: input, shape index: {}]   ;;  %s649_s5 = inlined_call_operand.hbm [shape: bf16[8,128], index: 5, kind: output, shape index: {}]  }
   0x1   :  { %11 = vsyncpa [#allocation6], 0 }
   0x2   :  { %12 = vsyncpa [#allocation4], 0  ;;  %s579_s18 = smov [#allocation5]  }
   0x3   :  { %s28_s19 = sshll.u32 %s579_s18, 4  ;;  %s29_s19 = int_to_ptr.vmem [resolvable:$true] %s28_s19 }
   0x4   :  { %s501_s20 = scalar_lea.vmem %s29_s19, 2048  ;;  %p506_p1 = scmp.lt.s32.totalorder %s29_s19, %s29_s19 }
   0x5   :  { %p502_p0 = scmp.ne.s32.totalorder %s29_s19, %s501_s20  ;;  %p507_p2 = scmp.lt.s32.totalorder %s501_s20, %s501_s20 }
   0x7   :  { %p508_p3 = por %p507_p2, %p506_p1 }
   0x9   :  { %p509_p4 = pnand %p508_p3, %p502_p0 }
   0xb   :  { %512 = shalt.err (!%p509_p4)
}
   0xc   :  { %s580_s21 = smov 64   ;;  %s581_s22 = smov 4  }
   0xd   :  { %34 = dma.hbm_to_vmem [thread:$0]  %s645_s1, 2048, %s29_s19, [#allocation6], %s580_s21, %s580_s21, %s581_s22  }
   0xe   :  { %s582_s25 = smov [#allocation2]   ;;  %s583_s27 = smov [#allocation7]  }
   0xf   :  { %s19_s26 = sshll.u32 %s582_s25, 4  ;;  %s42_s28 = sshll.u32 %s583_s27, 4  ;;  %s20_s26 = int_to_ptr.vmem [resolvable:$true] %s19_s26  ;;  %s43_s28 = int_to_ptr.vmem [resolvable:$true] %s42_s28 }
  0x10   :  { %s521_s29 = scalar_lea.vmem %s20_s26, 256  ;;  %p526_p6 = scmp.lt.s32.totalorder %s20_s26, %s20_s26 }
  0x11   :  { %p522_p5 = scmp.ne.s32.totalorder %s20_s26, %s521_s29  ;;  %p527_p7 = scmp.lt.s32.totalorder %s521_s29, %s521_s29 }
  0x13   :  { %p528_p8 = por %p527_p7, %p526_p6 }
  0x15   :  { %p529_p9 = pnand %p528_p8, %p522_p5 }
  0x17   :  { %532 = shalt.err (!%p529_p9)
}
  0x18   :  { %22 = dma.hbm_to_vmem [thread:$0]  %s644_s0, 256, %s20_s26, [#allocation3]  }
  0x19   :  { %s541_s7 = scalar_lea.vmem %s43_s28, 1024  ;;  %p546_p11 = scmp.lt.s32.totalorder %s43_s28, %s43_s28 }
  0x1a   :  { %p542_p10 = scmp.ne.s32.totalorder %s43_s28, %s541_s7  ;;  %p547_p12 = scmp.lt.s32.totalorder %s541_s7, %s541_s7 }
  0x1c   :  { %p548_p13 = por %p547_p12, %p546_p11 }
  0x1e   :  { %p549_p0 = pnand %p548_p13, %p542_p10 }
  0x20   :  { %552 = shalt.err (!%p549_p0)
}
  0x21   :  { %48 = dma.hbm_to_vmem [thread:$0]  %s647_s3, 1024, %s43_s28, [#allocation6], %s580_s21, %s580_s21, %s581_s22  }
  0x22   :  { %573 = dma.done.wait [#allocation3], 256  }
  0x23   :  { %574 = vsyncadd [#allocation3], 4294967040 }
  0x24   :  { %575 = dma.done.wait [#allocation6], 3072  }
  0x25   :  { %576 = vsyncadd [#allocation6], 4294964224  ;;  %v584_v0 = vmov 0.0   ;;  %v465_v1 = vld [vmem:[#allocation5 + $0x78] sm:$0xff]   ;;  %v467_v3 = vld [vmem:[#allocation5 + $0x70] sm:$0xff]   ;;  %vm585_vm0 = vmmov 0  }
  0x26   :  { %437 = vmatprep.subr.bf16.mxu1 %v584_v0  ;;  %v466_v2 = vld [vmem:[#allocation5 + $0x38] sm:$0xff]   ;;  %406 = vmatprep.subr.bf16.mxu0 %v465_v1  ;;  %v468_v4 = vld [vmem:[#allocation5 + $0x30] sm:$0xff]   ;;  %v469_v5 = vld [vmem:[#allocation5 + $0x68] sm:$0xff]  }
  0x27   :  { %407 = vmatpush3.bf16.msra.mxu0 %v466_v2  ;;  %v470_v6 = vld [vmem:[#allocation5 + $0x28] sm:$0xff]   ;;  %v471_v7 = vld [vmem:[#allocation5 + $0x60] sm:$0xff]   ;;  %v473_v9 = vld [vmem:[#allocation5 + $0x58] sm:$0xff]   ;;  %453 = vmatprep.mubr.msk.bf16.mxu1 %vm585_vm0, %v584_v0 }
  0x28   :  { %408 = vmatprep.subr.bf16.mxu0 %v467_v3  ;;  %v472_v8 = vld [vmem:[#allocation5 + $0x20] sm:$0xff]   ;;  %v474_v10 = vld [vmem:[#allocation5 + $0x18] sm:$0xff]   ;;  %v475_v11 = vld [vmem:[#allocation5 + $0x50] sm:$0xff]  }
  0x29   :  { %v62_v12 = vld [vmem:[#allocation2 + $0x8] sm:$0xff]  ;;  %v476_v15 = vld [vmem:[#allocation5 + $0x10] sm:$0xff]   ;;  %v477_v16 = vld [vmem:[#allocation5 + $0x48] sm:$0xff]  }
  0x2a   :  { %v64_v13 = vpack.c.bf16 %v62_v12, %v62_v12  ;;  %v481_v14 = vld [vmem:[#allocation7 + $0x38] sm:$0xff]   ;;  %v482_v17 = vld [vmem:[#allocation7 + $0x30] sm:$0xff]   ;;  %v478_v18 = vld [vmem:[#allocation5 + $0x8] sm:$0xff]  }
  0x2b   :  { %409 = vmatpush3.bf16.msra.mxu0 %v468_v4  ;;  %438 = vmatpush3.bf16.msra.mxu1 %v481_v14  ;;  %v479_v19 = vld [vmem:[#allocation5 + $0x40] sm:$0xff]   ;;  %v483_v20 = vld [vmem:[#allocation7 + $0x28] sm:$0xff]   ;;  %v61_v22 = vld [vmem:[#allocation2] sm:$0xff] }
  0x2c   :  { %410 = vmatprep.subr.bf16.mxu0 %v469_v5  ;;  %232 = vmatprep.mubr.bf16.mxu0 %v64_v13  ;;  %v480_v21 = vld [vmem:[#allocation5] sm:$0xff]   ;;  %v63_v24 = vpack.c.bf16 %v61_v22, %v61_v22  ;;  %v485_v25 = vld [vmem:[#allocation7 + $0x18] sm:$0xff]   ;;  %v486_v26 = vld [vmem:[#allocation7 + $0x10] sm:$0xff]  }
  0x2d   :  { %439 = vmatprep.subr.bf16.mxu1 %v584_v0  ;;  %v484_v23 = vld [vmem:[#allocation7 + $0x20] sm:$0xff]   ;;  %v487_v27 = vld [vmem:[#allocation7 + $0x8] sm:$0xff]   ;;  %v380_v30 = vld [vmem:[%s646_s2] ss:$0 sm:$0xff]  ;;  %s586_s2 = smov [#allocation8]  }
  0x2e   :  { %v488_v28 = vld [vmem:[#allocation7] sm:$0xff]   ;;  %v397_v38 = vld [vmem:[%s648_s4] ss:$0 sm:$0xff]  ;;  %s370_s11 = sshll.u32 %s586_s2, 4  ;;  %s371_s11 = int_to_ptr.vmem [resolvable:$true] %s370_s11 }
  0x2f   :  { %411 = vmatpush3.bf16.msra.mxu0 %v470_v6  ;;  %440 = vmatpush3.bf16.msra.mxu1 %v482_v17  ;;  %s553_s4 = scalar_lea.vmem %s371_s11, 64  ;;  %p558_p2 = scmp.lt.s32.totalorder %s371_s11, %s371_s11 }
  0x30   :  { %412 = vmatprep.subr.bf16.mxu0 %v471_v7  ;;  %441 = vmatprep.subr.bf16.mxu1 %v584_v0  ;;  %p554_p1 = scmp.ne.s32.totalorder %s371_s11, %s553_s4  ;;  %p559_p3 = scmp.lt.s32.totalorder %s553_s4, %s553_s4 }
  0x32   :  { %p560_p4 = por %p559_p3, %p558_p2 }
  0x33   :  { %413 = vmatpush3.bf16.msra.mxu0 %v472_v8  ;;  %442 = vmatpush3.bf16.msra.mxu1 %v483_v20 }
  0x34   :  { %414 = vmatprep.subr.bf16.mxu0 %v473_v9  ;;  %443 = vmatprep.subr.bf16.mxu1 %v584_v0  ;;  %p561_p5 = pnand %p560_p4, %p554_p1 }
  0x37   :  { %415 = vmatpush3.bf16.msra.mxu0 %v474_v10  ;;  %444 = vmatpush3.bf16.msra.mxu1 %v484_v23 }
  0x38   :  { %416 = vmatprep.subr.bf16.mxu0 %v475_v11  ;;  %445 = vmatprep.subr.bf16.mxu1 %v584_v0 }
  0x3b   :  { %417 = vmatpush3.bf16.msra.mxu0 %v476_v15  ;;  %446 = vmatpush3.bf16.msra.mxu1 %v485_v25 }
  0x3c   :  { %418 = vmatprep.subr.bf16.mxu0 %v477_v16  ;;  %447 = vmatprep.subr.bf16.mxu1 %v584_v0 }
  0x3f   :  { %419 = vmatpush3.bf16.msra.mxu0 %v478_v18  ;;  %448 = vmatpush3.bf16.msra.mxu1 %v486_v26 }
  0x40   :  { %420 = vmatprep.subr.bf16.mxu0 %v479_v19  ;;  %449 = vmatprep.subr.bf16.mxu1 %v584_v0 }
  0x43   :  { %421 = vmatpush3.bf16.msra.mxu0 %v480_v21  ;;  %450 = vmatpush3.bf16.msra.mxu1 %v487_v27 }
  0x44   :  { %451 = vmatprep.subr.bf16.mxu1 %v584_v0 }
  0x46   :  { %233 = vmatmul.mubr.bf16.vlgmr.msra.gmra.mxu0 %v63_v24 }
  0x47   :  { %452 = vmatpush3.bf16.msra.mxu1 %v488_v28 }
 0x106   :  { %v422_v29 = vpop.f32.mrf.mxu0 }
 0x108   :  { %v423_v31 = vpop.f32.mrf.mxu0 }
 0x109   :  { %v424_v32 = vadd.f32 %v423_v31, %v422_v29 }
 0x10a   :  { %v425_v33 = vpop.f32.mrf.mxu0 }
 0x10b   :  { %v235_v34 = vadd.f32 %v424_v32, %v380_v30 }
 0x10c   :  { %v426_v35 = vpop.f32.mrf.mxu0 }
 0x10d   :  { %v240_v36 = vmax.f32 %v235_v34, 0.0 }
 0x10f   :  { %v241_v37 = vpack.c.bf16 %v240_v36, %v240_v36 }
 0x111   :  { %454 = vmatmul.mubr.bf16.vlgmr.msra.gmra.mxu1 %v241_v37 }
 0x1d1   :  { %v347_v39 = vpop.f32.mrf.mxu1 }
 0x1d2   :  { %v348_v40 = vadd.f32 %v397_v38, %v347_v39 }
 0x1d3   :  { %v455_v41 = vpop.f32.mrf.mxu1 }
 0x1d4   :  { %353 = vmax.xlane.f32.xlu0 %v348_v40 }
 0x1d5   :  { %v350_v42 = vpop.f32.mrf.mxu1 }
 0x1d7   :  { %v456_v43 = vpop.f32.mrf.mxu1 }
 0x25d   :  { %v354_v44 = vpop.xlane.xlu0 %353 }
 0x25e   :  { %v355_v45 = vsub.f32 %v348_v40, %v354_v44 }
 0x260   :  { %v356_v46 = vmul.f32 1.442695, %v355_v45 }
 0x262   :  { %489 = vpow2.f32 %v356_v46 }
 0x26f   :  { %v490_v47 = vpop.eup %489 }
 0x270   :  { %358 = vadd.xlane.f32.xlu0 %v490_v47 }
 0x2f9   :  { %v359_v48 = vpop.xlane.xlu0 %358 }
 0x2fa   :  { %491 = vrcp.f32 %v359_v48 }
 0x307   :  { %v492_v49 = vpop.eup %491 }
 0x308   :  { %v361_v50 = vmul.f32 %v492_v49, %v490_v47 }
 0x30a   :  { %v362_v51 = vpack.c.bf16 %v361_v50, %v361_v50 }
 0x30c   :  { %363 = vst [vmem:[#allocation8] sm:$0xf] %v362_v51 }
 0x30d   :  { %564 = shalt.err (!%p561_p5)
}
 0x30e   :  { %373 = dma.vmem_to_hbm [thread:$0]  %s371_s11, 64, %s649_s5, [#allocation4]  }
 0x30f   :  { %577 = dma.done.wait [#allocation4], 64  }
 0x310   :  { %578 = vsyncadd [#allocation4], 4294967232 }
 0x311   :  { %377 = vsyncpa [#allocation3], 1 }
 0x312   :  { %378 = vsyncpa [#allocation6], 1 }
 0x313   :  { %379 = vsyncpa [#allocation4], 1 }

</bundles_post_ra>
